<compile_context>
chip_gen: v7x
topology: tpu7x:2x2x1
jax: 0.10.0
libtpu: 0.0.40
codegen_flags: <defaults>
</compile_context>

<pallas_src>
import functools

import jax
import jax.numpy as jnp
from jax import lax
from jax.experimental import pallas as pl
from jax.experimental.pallas import tpu as pltpu  # noqa: F401  (TPU backend / future scaling)


# ----------------------------- kernel ---------------------------------------

def _gelu_tanh(x):
    c = jnp.sqrt(2.0 / jnp.pi).astype(x.dtype)
    return 0.5 * x * (1.0 + jnp.tanh(c * (x + 0.044715 * x * x * x)))


def _layernorm(x, gamma, beta, eps=1e-6):
    # x: (N, D); gamma/beta: (1, D); biased variance, eps inside sqrt.
    mean = jnp.mean(x, axis=-1, keepdims=True)
    var = jnp.mean((x - mean) ** 2, axis=-1, keepdims=True)
    return (x - mean) * lax.rsqrt(var + eps) * gamma + beta


def block_kernel(n_heads,
                 x_ref, mask_ref,
                 wqkv_ref, bqkv_ref, wp_ref, bp_ref,
                 g1_ref, be1_ref, g2_ref, be2_ref,
                 w1_ref, bf1_ref, w2_ref, bf2_ref,
                 o_ref):
    x = x_ref[...]                       # (N, D), N = B*S
    mask = mask_ref[...]                 # (B, S), 1=keep / 0=masked
    B, S = mask.shape
    D = x.shape[-1]
    H = n_heads
    W = D // H
    N = B * S
    scale = 1.0 / (float(W) ** 0.5)

    # ---- norm1 ----
    h = _layernorm(x, g1_ref[...], be1_ref[...])

    # ---- fused QKV projection: one lane-dense (N, 3D) MXU matmul ----
    qkv = jnp.dot(h, wqkv_ref[...], preferred_element_type=jnp.float32) + bqkv_ref[...]
    q_all = qkv[:, :D] * scale           # scale on q (O(N*D)), not on the S^2 score tile
    k_all = qkv[:, D:2 * D]
    v_all = qkv[:, 2 * D:]

    # Additive mask bias built in-kernel from the (B, S) mask (broadcast over query rows).
    bias = (-10000.0 * (1.0 - mask))[:, None, :]            # (B, 1, S)

    # ---- per-head attention (H is small & static; loop is unrolled at trace time) ----
    ctx_heads = []
    for hh in range(H):
        qh = q_all[:, hh * W:(hh + 1) * W].reshape(B, S, W)
        kh = k_all[:, hh * W:(hh + 1) * W].reshape(B, S, W)
        vh = v_all[:, hh * W:(hh + 1) * W].reshape(B, S, W)

        s = jnp.einsum('bqw,bkw->bqk', qh, kh,
                       preferred_element_type=jnp.float32) + bias     # (B, S, S)
        s_max = jnp.max(s, axis=-1, keepdims=True)
        e = jnp.exp(s - s_max)
        denom = jnp.sum(e, axis=-1, keepdims=True)                    # (B, S, 1)

        ctx = jnp.einsum('bqk,bkw->bqw', e, vh,
                         preferred_element_type=jnp.float32)          # (B, S, W)
        ctx = ctx / denom                 # exact normalization, applied post-PV (O(S*W))
        ctx_heads.append(ctx.reshape(N, W))

    # ---- fused head-merge + output projection: one (N,D)x(D,D) dot ----
    ctx_all = jnp.concatenate(ctx_heads, axis=-1)                     # (N, D)
    attn = jnp.dot(ctx_all, wp_ref[...],
                   preferred_element_type=jnp.float32) + bp_ref[...]

    # ---- residual 1 ----
    x1 = x + attn

    # ---- norm2 + position-wise FFN + residual 2 ----
    h2 = _layernorm(x1, g2_ref[...], be2_ref[...])
    ff = jnp.dot(h2, w1_ref[...], preferred_element_type=jnp.float32) + bf1_ref[...]
    ff = _gelu_tanh(ff)
    ff = jnp.dot(ff, w2_ref[...], preferred_element_type=jnp.float32) + bf2_ref[...]

    o_ref[...] = (x1 + ff).astype(o_ref.dtype)


# ----------------------------- wrapper ---------------------------------------

@functools.partial(jax.jit, static_argnames=("n_heads",))
def transformer_block(x, mask, params, n_heads):
    """x: (B, S, D) f32, mask: (B, S) f32 (1=keep, 0=masked). Returns (B, S, D) f32."""
    B, S, D = x.shape
    FF = params["w1"].shape[-1]
    N = B * S

    # Wrapper-side (XLA, one-time) fusion of the QKV weights/biases into (D, 3D)/(1, 3D).
    wqkv = jnp.concatenate([params["wq"], params["wk"], params["wv"]], axis=-1)
    bqkv = jnp.concatenate([params["bq"], params["bk"], params["bv"]], axis=-1)

    x2d = x.reshape(N, D)

    flops = (2 * N * D * (3 * D)          # fused QKV
             + 2 * 2 * B * S * S * D      # scores + PV (summed over heads)
             + 2 * N * D * D              # output projection
             + 2 * N * D * FF             # fc1
             + 2 * N * FF * D)            # fc2
    transcendentals = B * n_heads * S * S + N * FF + 2 * N   # exp + tanh + rsqrt
    bytes_accessed = 4 * (2 * N * D + B * S + D * 3 * D + 3 * D
                          + D * D + D + 4 * D + D * FF + FF + FF * D + D)

    out2d = pl.pallas_call(
        functools.partial(block_kernel, n_heads),
        out_shape=jax.ShapeDtypeStruct((N, D), x.dtype),
        cost_estimate=pl.CostEstimate(flops=flops,
                                      transcendentals=transcendentals,
                                      bytes_accessed=bytes_accessed),
        # No grid: single invocation; every operand is a full-array VMEM block.
        # (Production sizes: "parallel" token-tile grid axis, bf16 MXU operands,
        #  pl.Buffered(1) weight specs, explicit vmem_limit_bytes, KV blocking.)
    )(x2d, mask, wqkv, bqkv,
      params["wp"], params["bp"],
      params["g1"], params["be1"], params["g2"], params["be2"],
      params["w1"], params["bf1"], params["w2"], params["bf2"])

    return out2d.reshape(B, S, D)


# ----------------------------- pure-JAX reference -----------------------------

def reference_block(x, mask, params, n_heads):
    def ln(t, g, b):
        m = jnp.mean(t, axis=-1, keepdims=True)
        v = jnp.mean((t - m) ** 2, axis=-1, keepdims=True)
        return (t - m) / jnp.sqrt(v + 1e-6) * g + b

    B, S, D = x.shape
    W = D // n_heads
    h = ln(x, params["g1"], params["be1"])
    q = h @ params["wq"] + params["bq"]
    k = h @ params["wk"] + params["bk"]
    v = h @ params["wv"] + params["bv"]

    def heads(t):  # (B,S,D) -> (B,H,S,W)
        return t.reshape(B, S, n_heads, W).transpose(0, 2, 1, 3)

    q, k, v = heads(q), heads(k), heads(v)
    s = jnp.einsum("bhqw,bhkw->bhqk", q, k) / jnp.sqrt(jnp.float32(W))
    s = s - 10000.0 * (1.0 - mask[:, None, None, :])
    p = jax.nn.softmax(s, axis=-1)
    a = jnp.einsum("bhqk,bhkw->bhqw", p, v).transpose(0, 2, 1, 3).reshape(B, S, D)
    a = a @ params["wp"] + params["bp"]
    x1 = x + a
    h2 = ln(x1, params["g2"], params["be2"])
    ff = h2 @ params["w1"] + params["bf1"]
    c = jnp.sqrt(2.0 / jnp.pi)
    ff = 0.5 * ff * (1.0 + jnp.tanh(c * (ff + 0.044715 * ff ** 3)))
    ff = ff @ params["w2"] + params["bf2"]
    return x1 + ff


# ----------------------------- main -------------------------------------------

if __name__ == "__main__":
    B, S, D, H, FF = 2, 8, 32, 4, 64

    key = jax.random.PRNGKey(0)
    keys = jax.random.split(key, 16)

    def lin(kw, fan_in, shape_w, shape_b):
        w = jax.random.normal(kw, shape_w, jnp.float32) / jnp.sqrt(jnp.float32(fan_in))
        b = jnp.zeros(shape_b, jnp.float32)
        return w, b

    wq, bq = lin(keys[0], D, (D, D), (1, D))
    wk, bk = lin(keys[1], D, (D, D), (1, D))
    wv, bv = lin(keys[2], D, (D, D), (1, D))
    wp, bp = lin(keys[3], D, (D, D), (1, D))
    w1, bf1 = lin(keys[4], D, (D, FF), (1, FF))
    w2, bf2 = lin(keys[5], FF, (FF, D), (1, D))
    bq = 0.01 * jax.random.normal(keys[6], (1, D), jnp.float32)
    bp = 0.01 * jax.random.normal(keys[7], (1, D), jnp.float32)
    bf1 = 0.01 * jax.random.normal(keys[8], (1, FF), jnp.float32)
    bf2 = 0.01 * jax.random.normal(keys[9], (1, D), jnp.float32)

    params = dict(
        wq=wq, bq=bq, wk=wk, bk=bk, wv=wv, bv=bv, wp=wp, bp=bp,
        g1=jnp.ones((1, D), jnp.float32), be1=jnp.zeros((1, D), jnp.float32),
        g2=jnp.ones((1, D), jnp.float32), be2=jnp.zeros((1, D), jnp.float32),
        w1=w1, bf1=bf1, w2=w2, bf2=bf2,
    )

    x = jax.random.normal(keys[10], (B, S, D), jnp.float32)
    # mask: last 2 tokens of batch 1 masked out
    mask = jnp.ones((B, S), jnp.float32).at[1, -2:].set(0.0)

    out = transformer_block(x, mask, params, H)
    out = jax.block_until_ready(out)

    ref = reference_block(x, mask, params, H)
    assert out.shape == (B, S, D)
    # Exact softmax normalization in the kernel -> tight tolerance.
    assert jnp.allclose(out, ref, rtol=1e-4, atol=1e-4), (
        float(jnp.max(jnp.abs(out - ref))))

    print("KERNEL_OK")
</pallas_src>

<mosaic_0001>
module attributes {stable_mosaic.version = 11 : i64} {
  func.func @block_kernel(%arg0: memref<16x32xf32, #tpu.memory_space<vmem>>, %arg1: memref<2x8xf32, #tpu.memory_space<vmem>>, %arg2: memref<32x96xf32, #tpu.memory_space<vmem>>, %arg3: memref<1x96xf32, #tpu.memory_space<vmem>>, %arg4: memref<32x32xf32, #tpu.memory_space<vmem>>, %arg5: memref<1x32xf32, #tpu.memory_space<vmem>>, %arg6: memref<1x32xf32, #tpu.memory_space<vmem>>, %arg7: memref<1x32xf32, #tpu.memory_space<vmem>>, %arg8: memref<1x32xf32, #tpu.memory_space<vmem>>, %arg9: memref<1x32xf32, #tpu.memory_space<vmem>>, %arg10: memref<32x64xf32, #tpu.memory_space<vmem>>, %arg11: memref<1x64xf32, #tpu.memory_space<vmem>>, %arg12: memref<64x32xf32, #tpu.memory_space<vmem>>, %arg13: memref<1x32xf32, #tpu.memory_space<vmem>>, %arg14: memref<16x32xf32, #tpu.memory_space<vmem>>) attributes {dimension_semantics = [], scalar_prefetch = 0 : i64, scratch_operands = 0 : i64, tpu.core_type = #tpu.core_type<tc>} {
    %c0 = arith.constant 0 : index
    %c0_0 = arith.constant 0 : index
    %0 = vector.load %arg0[%c0, %c0_0] : memref<16x32xf32, #tpu.memory_space<vmem>>, vector<16x32xf32>
    %c0_1 = arith.constant 0 : index
    %c0_2 = arith.constant 0 : index
    %1 = vector.load %arg1[%c0_1, %c0_2] : memref<2x8xf32, #tpu.memory_space<vmem>>, vector<2x8xf32>
    %c0_3 = arith.constant 0 : index
    %c0_4 = arith.constant 0 : index
    %2 = vector.load %arg6[%c0_3, %c0_4] : memref<1x32xf32, #tpu.memory_space<vmem>>, vector<1x32xf32>
    %c0_5 = arith.constant 0 : index
    %c0_6 = arith.constant 0 : index
    %3 = vector.load %arg7[%c0_5, %c0_6] : memref<1x32xf32, #tpu.memory_space<vmem>>, vector<1x32xf32>
    %cst = arith.constant dense<0.000000e+00> : vector<16xf32>
    %4 = vector.multi_reduction <add>, %0, %cst [1] : vector<16x32xf32> to vector<16xf32>
    %5 = vector.shape_cast %4 : vector<16xf32> to vector<16x1xf32>
    %cst_7 = arith.constant 3.200000e+01 : f32
    %6 = vector.broadcast %cst_7 : f32 to vector<16x1xf32>
    %7 = arith.divf %5, %6 : vector<16x1xf32>
    %8 = vector.broadcast %7 : vector<16x1xf32> to vector<16x32xf32>
    %9 = arith.subf %0, %8 : vector<16x32xf32>
    %10 = arith.mulf %9, %9 : vector<16x32xf32>
    %cst_8 = arith.constant dense<0.000000e+00> : vector<16xf32>
    %11 = vector.multi_reduction <add>, %10, %cst_8 [1] : vector<16x32xf32> to vector<16xf32>
    %12 = vector.shape_cast %11 : vector<16xf32> to vector<16x1xf32>
    %cst_9 = arith.constant 3.200000e+01 : f32
    %13 = vector.broadcast %cst_9 : f32 to vector<16x1xf32>
    %14 = arith.divf %12, %13 : vector<16x1xf32>
    %15 = vector.broadcast %7 : vector<16x1xf32> to vector<16x32xf32>
    %16 = arith.subf %0, %15 : vector<16x32xf32>
    %cst_10 = arith.constant 9.99999997E-7 : f32
    %17 = vector.broadcast %cst_10 : f32 to vector<16x1xf32>
    %18 = arith.addf %14, %17 : vector<16x1xf32>
    %19 = math.rsqrt %18 : vector<16x1xf32>
    %20 = vector.broadcast %19 : vector<16x1xf32> to vector<16x32xf32>
    %21 = arith.mulf %16, %20 : vector<16x32xf32>
    %22 = vector.broadcast %2 : vector<1x32xf32> to vector<16x32xf32>
    %23 = arith.mulf %21, %22 : vector<16x32xf32>
    %24 = vector.broadcast %3 : vector<1x32xf32> to vector<16x32xf32>
    %25 = arith.addf %23, %24 : vector<16x32xf32>
    %c0_11 = arith.constant 0 : index
    %c0_12 = arith.constant 0 : index
    %26 = vector.load %arg2[%c0_11, %c0_12] : memref<32x96xf32, #tpu.memory_space<vmem>>, vector<32x96xf32>
    %cst_13 = arith.constant dense<0.000000e+00> : vector<16x96xf32>
    %27 = tpu.matmul %25, %26, %cst_13 {dimension_numbers = #tpu.dot_dimension_numbers<[1], [0], [0], [1], [0, 0, 1, 1], [], []>} : vector<16x32xf32>, vector<32x96xf32>, vector<16x96xf32> -> vector<16x96xf32>
    %c0_14 = arith.constant 0 : index
    %c0_15 = arith.constant 0 : index
    %28 = vector.load %arg3[%c0_14, %c0_15] : memref<1x96xf32, #tpu.memory_space<vmem>>, vector<1x96xf32>
    %29 = vector.broadcast %28 : vector<1x96xf32> to vector<16x96xf32>
    %30 = arith.addf %27, %29 : vector<16x96xf32>
    %31 = vector.extract_strided_slice %30 {offsets = [0, 0], sizes = [16, 32], strides = [1, 1]} : vector<16x96xf32> to vector<16x32xf32>
    %cst_16 = arith.constant 0.353553385 : f32
    %32 = vector.broadcast %cst_16 : f32 to vector<16x32xf32>
    %33 = arith.mulf %31, %32 : vector<16x32xf32>
    %34 = vector.extract_strided_slice %30 {offsets = [0, 32], sizes = [16, 32], strides = [1, 1]} : vector<16x96xf32> to vector<16x32xf32>
    %35 = vector.extract_strided_slice %30 {offsets = [0, 64], sizes = [16, 32], strides = [1, 1]} : vector<16x96xf32> to vector<16x32xf32>
    %cst_17 = arith.constant 1.000000e+00 : f32
    %36 = vector.broadcast %cst_17 : f32 to vector<2x8xf32>
    %37 = arith.subf %36, %1 : vector<2x8xf32>
    %cst_18 = arith.constant -1.000000e+04 : f32
    %38 = vector.broadcast %cst_18 : f32 to vector<2x8xf32>
    %39 = arith.mulf %38, %37 : vector<2x8xf32>
    %40 = vector.shape_cast %39 : vector<2x8xf32> to vector<2x1x8xf32>
    %41 = vector.extract_strided_slice %33 {offsets = [0, 0], sizes = [16, 8], strides = [1, 1]} : vector<16x32xf32> to vector<16x8xf32>
    %42 = vector.shape_cast %41 : vector<16x8xf32> to vector<2x8x8xf32>
    %43 = vector.extract_strided_slice %34 {offsets = [0, 0], sizes = [16, 8], strides = [1, 1]} : vector<16x32xf32> to vector<16x8xf32>
    %44 = vector.shape_cast %43 : vector<16x8xf32> to vector<2x8x8xf32>
    %45 = vector.extract_strided_slice %35 {offsets = [0, 0], sizes = [16, 8], strides = [1, 1]} : vector<16x32xf32> to vector<16x8xf32>
    %46 = vector.shape_cast %45 : vector<16x8xf32> to vector<2x8x8xf32>
    "tpu.trace_start"() <{level = 10 : i32, message = "bqw,bkw->bqk"}> : () -> ()
    %cst_19 = arith.constant dense<0.000000e+00> : vector<2x8x8xf32>
    %47 = tpu.matmul %42, %44, %cst_19 {dimension_numbers = #tpu.dot_dimension_numbers<[2], [2], [1], [1], [0, 0, 0, 1, 1, 1], [0], [0]>} : vector<2x8x8xf32>, vector<2x8x8xf32>, vector<2x8x8xf32> -> vector<2x8x8xf32>
    "tpu.trace_stop"() : () -> ()
    %48 = vector.broadcast %40 : vector<2x1x8xf32> to vector<2x8x8xf32>
    %49 = arith.addf %47, %48 : vector<2x8x8xf32>
    %cst_20 = arith.constant dense<0xFF800000> : vector<2x8xf32>
    %50 = vector.multi_reduction <maximumf>, %49, %cst_20 [2] : vector<2x8x8xf32> to vector<2x8xf32>
    %51 = vector.shape_cast %50 : vector<2x8xf32> to vector<2x8x1xf32>
    %52 = vector.broadcast %51 : vector<2x8x1xf32> to vector<2x8x8xf32>
    %53 = arith.subf %49, %52 : vector<2x8x8xf32>
    %54 = math.exp %53 : vector<2x8x8xf32>
    %cst_21 = arith.constant dense<0.000000e+00> : vector<2x8xf32>
    %55 = vector.multi_reduction <add>, %54, %cst_21 [2] : vector<2x8x8xf32> to vector<2x8xf32>
    %56 = vector.shape_cast %55 : vector<2x8xf32> to vector<2x8x1xf32>
    "tpu.trace_start"() <{level = 10 : i32, message = "bqk,bkw->bqw"}> : () -> ()
    %cst_22 = arith.constant dense<0.000000e+00> : vector<2x8x8xf32>
    %57 = tpu.matmul %54, %46, %cst_22 {dimension_numbers = #tpu.dot_dimension_numbers<[2], [1], [1], [2], [0, 0, 0, 1, 1, 2], [0], [0]>} : vector<2x8x8xf32>, vector<2x8x8xf32>, vector<2x8x8xf32> -> vector<2x8x8xf32>
    "tpu.trace_stop"() : () -> ()
    %58 = vector.broadcast %56 : vector<2x8x1xf32> to vector<2x8x8xf32>
    %59 = arith.divf %57, %58 : vector<2x8x8xf32>
    %60 = vector.shape_cast %59 : vector<2x8x8xf32> to vector<16x8xf32>
    %61 = vector.extract_strided_slice %33 {offsets = [0, 8], sizes = [16, 8], strides = [1, 1]} : vector<16x32xf32> to vector<16x8xf32>
    %62 = vector.shape_cast %61 : vector<16x8xf32> to vector<2x8x8xf32>
    %63 = vector.extract_strided_slice %34 {offsets = [0, 8], sizes = [16, 8], strides = [1, 1]} : vector<16x32xf32> to vector<16x8xf32>
    %64 = vector.shape_cast %63 : vector<16x8xf32> to vector<2x8x8xf32>
    %65 = vector.extract_strided_slice %35 {offsets = [0, 8], sizes = [16, 8], strides = [1, 1]} : vector<16x32xf32> to vector<16x8xf32>
    %66 = vector.shape_cast %65 : vector<16x8xf32> to vector<2x8x8xf32>
    "tpu.trace_start"() <{level = 10 : i32, message = "bqw,bkw->bqk"}> : () -> ()
    %cst_23 = arith.constant dense<0.000000e+00> : vector<2x8x8xf32>
    %67 = tpu.matmul %62, %64, %cst_23 {dimension_numbers = #tpu.dot_dimension_numbers<[2], [2], [1], [1], [0, 0, 0, 1, 1, 1], [0], [0]>} : vector<2x8x8xf32>, vector<2x8x8xf32>, vector<2x8x8xf32> -> vector<2x8x8xf32>
    "tpu.trace_stop"() : () -> ()
    %68 = vector.broadcast %40 : vector<2x1x8xf32> to vector<2x8x8xf32>
    %69 = arith.addf %67, %68 : vector<2x8x8xf32>
    %cst_24 = arith.constant dense<0xFF800000> : vector<2x8xf32>
    %70 = vector.multi_reduction <maximumf>, %69, %cst_24 [2] : vector<2x8x8xf32> to vector<2x8xf32>
    %71 = vector.shape_cast %70 : vector<2x8xf32> to vector<2x8x1xf32>
    %72 = vector.broadcast %71 : vector<2x8x1xf32> to vector<2x8x8xf32>
    %73 = arith.subf %69, %72 : vector<2x8x8xf32>
    %74 = math.exp %73 : vector<2x8x8xf32>
    %cst_25 = arith.constant dense<0.000000e+00> : vector<2x8xf32>
    %75 = vector.multi_reduction <add>, %74, %cst_25 [2] : vector<2x8x8xf32> to vector<2x8xf32>
    %76 = vector.shape_cast %75 : vector<2x8xf32> to vector<2x8x1xf32>
    "tpu.trace_start"() <{level = 10 : i32, message = "bqk,bkw->bqw"}> : () -> ()
    %cst_26 = arith.constant dense<0.000000e+00> : vector<2x8x8xf32>
    %77 = tpu.matmul %74, %66, %cst_26 {dimension_numbers = #tpu.dot_dimension_numbers<[2], [1], [1], [2], [0, 0, 0, 1, 1, 2], [0], [0]>} : vector<2x8x8xf32>, vector<2x8x8xf32>, vector<2x8x8xf32> -> vector<2x8x8xf32>
    "tpu.trace_stop"() : () -> ()
    %78 = vector.broadcast %76 : vector<2x8x1xf32> to vector<2x8x8xf32>
    %79 = arith.divf %77, %78 : vector<2x8x8xf32>
    %80 = vector.shape_cast %79 : vector<2x8x8xf32> to vector<16x8xf32>
    %81 = vector.extract_strided_slice %33 {offsets = [0, 16], sizes = [16, 8], strides = [1, 1]} : vector<16x32xf32> to vector<16x8xf32>
    %82 = vector.shape_cast %81 : vector<16x8xf32> to vector<2x8x8xf32>
    %83 = vector.extract_strided_slice %34 {offsets = [0, 16], sizes = [16, 8], strides = [1, 1]} : vector<16x32xf32> to vector<16x8xf32>
    %84 = vector.shape_cast %83 : vector<16x8xf32> to vector<2x8x8xf32>
    %85 = vector.extract_strided_slice %35 {offsets = [0, 16], sizes = [16, 8], strides = [1, 1]} : vector<16x32xf32> to vector<16x8xf32>
    %86 = vector.shape_cast %85 : vector<16x8xf32> to vector<2x8x8xf32>
    "tpu.trace_start"() <{level = 10 : i32, message = "bqw,bkw->bqk"}> : () -> ()
    %cst_27 = arith.constant dense<0.000000e+00> : vector<2x8x8xf32>
    %87 = tpu.matmul %82, %84, %cst_27 {dimension_numbers = #tpu.dot_dimension_numbers<[2], [2], [1], [1], [0, 0, 0, 1, 1, 1], [0], [0]>} : vector<2x8x8xf32>, vector<2x8x8xf32>, vector<2x8x8xf32> -> vector<2x8x8xf32>
    "tpu.trace_stop"() : () -> ()
    %88 = vector.broadcast %40 : vector<2x1x8xf32> to vector<2x8x8xf32>
    %89 = arith.addf %87, %88 : vector<2x8x8xf32>
    %cst_28 = arith.constant dense<0xFF800000> : vector<2x8xf32>
    %90 = vector.multi_reduction <maximumf>, %89, %cst_28 [2] : vector<2x8x8xf32> to vector<2x8xf32>
    %91 = vector.shape_cast %90 : vector<2x8xf32> to vector<2x8x1xf32>
    %92 = vector.broadcast %91 : vector<2x8x1xf32> to vector<2x8x8xf32>
    %93 = arith.subf %89, %92 : vector<2x8x8xf32>
    %94 = math.exp %93 : vector<2x8x8xf32>
    %cst_29 = arith.constant dense<0.000000e+00> : vector<2x8xf32>
    %95 = vector.multi_reduction <add>, %94, %cst_29 [2] : vector<2x8x8xf32> to vector<2x8xf32>
    %96 = vector.shape_cast %95 : vector<2x8xf32> to vector<2x8x1xf32>
    "tpu.trace_start"() <{level = 10 : i32, message = "bqk,bkw->bqw"}> : () -> ()
    %cst_30 = arith.constant dense<0.000000e+00> : vector<2x8x8xf32>
    %97 = tpu.matmul %94, %86, %cst_30 {dimension_numbers = #tpu.dot_dimension_numbers<[2], [1], [1], [2], [0, 0, 0, 1, 1, 2], [0], [0]>} : vector<2x8x8xf32>, vector<2x8x8xf32>, vector<2x8x8xf32> -> vector<2x8x8xf32>
    "tpu.trace_stop"() : () -> ()
    %98 = vector.broadcast %96 : vector<2x8x1xf32> to vector<2x8x8xf32>
    %99 = arith.divf %97, %98 : vector<2x8x8xf32>
    %100 = vector.shape_cast %99 : vector<2x8x8xf32> to vector<16x8xf32>
    %101 = vector.extract_strided_slice %33 {offsets = [0, 24], sizes = [16, 8], strides = [1, 1]} : vector<16x32xf32> to vector<16x8xf32>
    %102 = vector.shape_cast %101 : vector<16x8xf32> to vector<2x8x8xf32>
    %103 = vector.extract_strided_slice %34 {offsets = [0, 24], sizes = [16, 8], strides = [1, 1]} : vector<16x32xf32> to vector<16x8xf32>
    %104 = vector.shape_cast %103 : vector<16x8xf32> to vector<2x8x8xf32>
    %105 = vector.extract_strided_slice %35 {offsets = [0, 24], sizes = [16, 8], strides = [1, 1]} : vector<16x32xf32> to vector<16x8xf32>
    %106 = vector.shape_cast %105 : vector<16x8xf32> to vector<2x8x8xf32>
    "tpu.trace_start"() <{level = 10 : i32, message = "bqw,bkw->bqk"}> : () -> ()
    %cst_31 = arith.constant dense<0.000000e+00> : vector<2x8x8xf32>
    %107 = tpu.matmul %102, %104, %cst_31 {dimension_numbers = #tpu.dot_dimension_numbers<[2], [2], [1], [1], [0, 0, 0, 1, 1, 1], [0], [0]>} : vector<2x8x8xf32>, vector<2x8x8xf32>, vector<2x8x8xf32> -> vector<2x8x8xf32>
    "tpu.trace_stop"() : () -> ()
    %108 = vector.broadcast %40 : vector<2x1x8xf32> to vector<2x8x8xf32>
    %109 = arith.addf %107, %108 : vector<2x8x8xf32>
    %cst_32 = arith.constant dense<0xFF800000> : vector<2x8xf32>
    %110 = vector.multi_reduction <maximumf>, %109, %cst_32 [2] : vector<2x8x8xf32> to vector<2x8xf32>
    %111 = vector.shape_cast %110 : vector<2x8xf32> to vector<2x8x1xf32>
    %112 = vector.broadcast %111 : vector<2x8x1xf32> to vector<2x8x8xf32>
    %113 = arith.subf %109, %112 : vector<2x8x8xf32>
    %114 = math.exp %113 : vector<2x8x8xf32>
    %cst_33 = arith.constant dense<0.000000e+00> : vector<2x8xf32>
    %115 = vector.multi_reduction <add>, %114, %cst_33 [2] : vector<2x8x8xf32> to vector<2x8xf32>
    %116 = vector.shape_cast %115 : vector<2x8xf32> to vector<2x8x1xf32>
    "tpu.trace_start"() <{level = 10 : i32, message = "bqk,bkw->bqw"}> : () -> ()
    %cst_34 = arith.constant dense<0.000000e+00> : vector<2x8x8xf32>
    %117 = tpu.matmul %114, %106, %cst_34 {dimension_numbers = #tpu.dot_dimension_numbers<[2], [1], [1], [2], [0, 0, 0, 1, 1, 2], [0], [0]>} : vector<2x8x8xf32>, vector<2x8x8xf32>, vector<2x8x8xf32> -> vector<2x8x8xf32>
    "tpu.trace_stop"() : () -> ()
    %118 = vector.broadcast %116 : vector<2x8x1xf32> to vector<2x8x8xf32>
    %119 = arith.divf %117, %118 : vector<2x8x8xf32>
    %120 = vector.shape_cast %119 : vector<2x8x8xf32> to vector<16x8xf32>
    %121 = tpu.concatenate %60, %80, %100, %120 in 1 : vector<16x8xf32>, vector<16x8xf32>, vector<16x8xf32>, vector<16x8xf32> -> vector<16x32xf32>
    %c0_35 = arith.constant 0 : index
    %c0_36 = arith.constant 0 : index
    %122 = vector.load %arg4[%c0_35, %c0_36] : memref<32x32xf32, #tpu.memory_space<vmem>>, vector<32x32xf32>
    %cst_37 = arith.constant dense<0.000000e+00> : vector<16x32xf32>
    %123 = tpu.matmul %121, %122, %cst_37 {dimension_numbers = #tpu.dot_dimension_numbers<[1], [0], [0], [1], [0, 0, 1, 1], [], []>} : vector<16x32xf32>, vector<32x32xf32>, vector<16x32xf32> -> vector<16x32xf32>
    %c0_38 = arith.constant 0 : index
    %c0_39 = arith.constant 0 : index
    %124 = vector.load %arg5[%c0_38, %c0_39] : memref<1x32xf32, #tpu.memory_space<vmem>>, vector<1x32xf32>
    %125 = vector.broadcast %124 : vector<1x32xf32> to vector<16x32xf32>
    %126 = arith.addf %123, %125 : vector<16x32xf32>
    %127 = arith.addf %0, %126 : vector<16x32xf32>
    %c0_40 = arith.constant 0 : index
    %c0_41 = arith.constant 0 : index
    %128 = vector.load %arg8[%c0_40, %c0_41] : memref<1x32xf32, #tpu.memory_space<vmem>>, vector<1x32xf32>
    %c0_42 = arith.constant 0 : index
    %c0_43 = arith.constant 0 : index
    %129 = vector.load %arg9[%c0_42, %c0_43] : memref<1x32xf32, #tpu.memory_space<vmem>>, vector<1x32xf32>
    %cst_44 = arith.constant dense<0.000000e+00> : vector<16xf32>
    %130 = vector.multi_reduction <add>, %127, %cst_44 [1] : vector<16x32xf32> to vector<16xf32>
    %131 = vector.shape_cast %130 : vector<16xf32> to vector<16x1xf32>
    %cst_45 = arith.constant 3.200000e+01 : f32
    %132 = vector.broadcast %cst_45 : f32 to vector<16x1xf32>
    %133 = arith.divf %131, %132 : vector<16x1xf32>
    %134 = vector.broadcast %133 : vector<16x1xf32> to vector<16x32xf32>
    %135 = arith.subf %127, %134 : vector<16x32xf32>
    %136 = arith.mulf %135, %135 : vector<16x32xf32>
    %cst_46 = arith.constant dense<0.000000e+00> : vector<16xf32>
    %137 = vector.multi_reduction <add>, %136, %cst_46 [1] : vector<16x32xf32> to vector<16xf32>
    %138 = vector.shape_cast %137 : vector<16xf32> to vector<16x1xf32>
    %cst_47 = arith.constant 3.200000e+01 : f32
    %139 = vector.broadcast %cst_47 : f32 to vector<16x1xf32>
    %140 = arith.divf %138, %139 : vector<16x1xf32>
    %141 = vector.broadcast %133 : vector<16x1xf32> to vector<16x32xf32>
    %142 = arith.subf %127, %141 : vector<16x32xf32>
    %cst_48 = arith.constant 9.99999997E-7 : f32
    %143 = vector.broadcast %cst_48 : f32 to vector<16x1xf32>
    %144 = arith.addf %140, %143 : vector<16x1xf32>
    %145 = math.rsqrt %144 : vector<16x1xf32>
    %146 = vector.broadcast %145 : vector<16x1xf32> to vector<16x32xf32>
    %147 = arith.mulf %142, %146 : vector<16x32xf32>
    %148 = vector.broadcast %128 : vector<1x32xf32> to vector<16x32xf32>
    %149 = arith.mulf %147, %148 : vector<16x32xf32>
    %150 = vector.broadcast %129 : vector<1x32xf32> to vector<16x32xf32>
    %151 = arith.addf %149, %150 : vector<16x32xf32>
    %c0_49 = arith.constant 0 : index
    %c0_50 = arith.constant 0 : index
    %152 = vector.load %arg10[%c0_49, %c0_50] : memref<32x64xf32, #tpu.memory_space<vmem>>, vector<32x64xf32>
    %cst_51 = arith.constant dense<0.000000e+00> : vector<16x64xf32>
    %153 = tpu.matmul %151, %152, %cst_51 {dimension_numbers = #tpu.dot_dimension_numbers<[1], [0], [0], [1], [0, 0, 1, 1], [], []>} : vector<16x32xf32>, vector<32x64xf32>, vector<16x64xf32> -> vector<16x64xf32>
    %c0_52 = arith.constant 0 : index
    %c0_53 = arith.constant 0 : index
    %154 = vector.load %arg11[%c0_52, %c0_53] : memref<1x64xf32, #tpu.memory_space<vmem>>, vector<1x64xf32>
    %155 = vector.broadcast %154 : vector<1x64xf32> to vector<16x64xf32>
    %156 = arith.addf %153, %155 : vector<16x64xf32>
    %cst_54 = arith.constant 0.636619746 : f32
    %157 = math.sqrt %cst_54 : f32
    %cst_55 = arith.constant 5.000000e-01 : f32
    %158 = vector.broadcast %cst_55 : f32 to vector<16x64xf32>
    %159 = arith.mulf %158, %156 : vector<16x64xf32>
    %cst_56 = arith.constant 4.471500e-02 : f32
    %160 = vector.broadcast %cst_56 : f32 to vector<16x64xf32>
    %161 = arith.mulf %160, %156 : vector<16x64xf32>
    %162 = arith.mulf %161, %156 : vector<16x64xf32>
    %163 = arith.mulf %162, %156 : vector<16x64xf32>
    %164 = arith.addf %156, %163 : vector<16x64xf32>
    %165 = vector.broadcast %157 : f32 to vector<16x64xf32>
    %166 = arith.mulf %165, %164 : vector<16x64xf32>
    %167 = math.tanh %166 : vector<16x64xf32>
    %cst_57 = arith.constant 1.000000e+00 : f32
    %168 = vector.broadcast %cst_57 : f32 to vector<16x64xf32>
    %169 = arith.addf %168, %167 : vector<16x64xf32>
    %170 = arith.mulf %159, %169 : vector<16x64xf32>
    %c0_58 = arith.constant 0 : index
    %c0_59 = arith.constant 0 : index
    %171 = vector.load %arg12[%c0_58, %c0_59] : memref<64x32xf32, #tpu.memory_space<vmem>>, vector<64x32xf32>
    %cst_60 = arith.constant dense<0.000000e+00> : vector<16x32xf32>
    %172 = tpu.matmul %170, %171, %cst_60 {dimension_numbers = #tpu.dot_dimension_numbers<[1], [0], [0], [1], [0, 0, 1, 1], [], []>} : vector<16x64xf32>, vector<64x32xf32>, vector<16x32xf32> -> vector<16x32xf32>
    %c0_61 = arith.constant 0 : index
    %c0_62 = arith.constant 0 : index
    %173 = vector.load %arg13[%c0_61, %c0_62] : memref<1x32xf32, #tpu.memory_space<vmem>>, vector<1x32xf32>
    %174 = vector.broadcast %173 : vector<1x32xf32> to vector<16x32xf32>
    %175 = arith.addf %172, %174 : vector<16x32xf32>
    %176 = arith.addf %127, %175 : vector<16x32xf32>
    %c0_63 = arith.constant 0 : index
    %c0_64 = arith.constant 0 : index
    %177 = vector.load %arg14[%c0_63, %c0_64] : memref<16x32xf32, #tpu.memory_space<vmem>>, vector<16x32xf32>
    tpu.vector_store %arg14[%c0_63, %c0_64], %176 {strides = array<i32>} : memref<16x32xf32, #tpu.memory_space<vmem>>, vector<16x32xf32>,
    return
  }
}

</mosaic_0001>

<bundles_post_ra>
// kernel: transformer_block.1
= control target key start
LH: loop header
LB: loop body
LE: loop exit
PB: predicated region body
PF: predicated region fallthrough
CT: control target
= control target key end

     0   :  { %vm53_vm0 = vcmask 261120   ;;  %s2715_s0 = inlined_call_operand.vmem [shape: f32[16,32], index: 0, kind: input, shape index: {}]   ;;  %s2716_s1 = inlined_call_operand.vmem [shape: f32[2,8], index: 1, kind: input, shape index: {}]   ;;  %s2717_s2 = inlined_call_operand.vmem [shape: f32[32,96], index: 2, kind: input, shape index: {}]   ;;  %s2718_s3 = inlined_call_operand.vmem [shape: f32[1,96], index: 3, kind: input, shape index: {}]   ;;  %s2719_s4 = inlined_call_operand.vmem [shape: f32[32,32], index: 4, kind: input, shape index: {}]   ;;  %s2720_s5 = inlined_call_operand.vmem [shape: f32[1,32], index: 5, kind: input, shape index: {}]   ;;  %s2721_s6 = inlined_call_operand.vmem [shape: f32[1,32], index: 6, kind: input, shape index: {}]   ;;  %s2722_s7 = inlined_call_operand.vmem [shape: f32[1,32], index: 7, kind: input, shape index: {}]   ;;  %s2723_s8 = inlined_call_operand.vmem [shape: f32[1,32], index: 8, kind: input, shape index: {}]   ;;  %s2724_s9 = inlined_call_operand.vmem [shape: f32[1,32], index: 9, kind: input, shape index: {}]   ;;  %s2725_s10 = inlined_call_operand.vmem [shape: f32[32,64], index: 10, kind: input, shape index: {}]   ;;  %s2726_s11 = inlined_call_operand.vmem [shape: f32[1,64], index: 11, kind: input, shape index: {}]   ;;  %s2727_s12 = inlined_call_operand.vmem [shape: f32[64,32], index: 12, kind: input, shape index: {}]   ;;  %s2728_s13 = inlined_call_operand.vmem [shape: f32[1,32], index: 13, kind: input, shape index: {}]   ;;  %s2729_s14 = inlined_call_operand.hbm [shape: f32[16,32], index: 14, kind: output, shape index: {}]  }
   0x1   :  { %v2400_v0 = vld [vmem:[%s2715_s0] sm:$0xff]  ;;  %v2405_v1 = vld [vmem:[%s2715_s0 + $0x8] sm:$0xff] }
   0x2   :  { %19 = vsyncpa [#allocation3], 0  ;;  %v54_v2 = vsel %vm53_vm0, %v2400_v0, 0.0  ;;  %v57_v3 = vsel %vm53_vm0, %v2405_v1, 0.0  ;;  %v97_v14 = vld [vmem:[%s2717_s2] sm:$0xff]  ;;  %v98_v15 = vld [vmem:[%s2717_s2 + $0x8] sm:$0xff]  ;;  %v197_v48 = vlaneseq }
   0x3   :  { %55 = vadd.xlane.f32.xlu0 %v54_v2  ;;  %v99_v16 = vld [vmem:[%s2717_s2 + $0x10] sm:$0xff]  ;;  %v2176_v17 = vpack.c.bf16 %v98_v15, %v97_v14  ;;  %v100_v18 = vld [vmem:[%s2717_s2 + $0x18] sm:$0xff]  ;;  %v1944_v27 = vld [vmem:[%s2721_s6] ss:$0 sm:$0xff]  ;;  %v2303_v36 = vmov 0.0   ;;  %vm2304_vm1 = vmmov 0  }
   0x4   :  { %v2180_v19 = vpack.c.bf16 %v100_v18, %v99_v16  ;;  %v1945_v29 = vld [vmem:[%s2722_s7] ss:$0 sm:$0xff]  ;;  %2065 = vmatprep.subr.mxu0 %v2303_v36  ;;  %2067 = vmatprep.mubr.msk.f32.mxu0 %vm2304_vm1, %v2303_v36  ;;  %s2305_s27 = smov 96   ;;  %vm229_vm2 = vcmask 64512   ;;  %v2306_v46 = vmov 1966171168  }
   0x5   :  { %2177 = vmatprep.subr.bf16.mxu1 %v2176_v17  ;;  %v1946_v37 = vld [vmem:[%s2718_s3] ss:$0 sm:$0xff]  ;;  %v195_v47 = vunpack.c.l.s4 %v2306_v46  ;;  %v198_v52 = vshrl.u32 %v197_v48, 7  ;;  %s2308_s29 = smov 88   ;;  %s2309_s30 = smov 120   ;;  %vm1573_vm3 = vcmask 130048  }
   0x6   :  { %2179 = vmatpush3.bf16.msra.mxu1 %v2176_v17  ;;  %v50_v49 = vld [vmem:[%s2716_s1] sm:$0x3]  ;;  %s2307_s1 = smov 64   ;;  %s2310_s15 = smov 56   ;;  %vm1576_vm4 = vcmask 195584   ;;  %vm1842_vm5 = vcmask 523264  }
   0x7   :  { %58 = vadd.xlane.f32.xlu0 %v57_v3  ;;  %2181 = vmatprep.subr.bf16.mxu1 %v2180_v19  ;;  %v191_v50 = vsub.f32 1.0, %v50_v49  ;;  %v196_v51 = vunpack.c.0.s8 %v195_v47  ;;  %v218_v57 = vsub.s32 0, %v198_v52  ;;  %s2311_s16 = smov 80   ;;  %s2312_s0 = smov 112  }
   0x8   :  { %s2313_s17 = smov 48   ;;  %s2314_s18 = smov 72  }
   0x9   :  { %v192_v53 = vmul.f32 -10000.0, %v191_v50  ;;  %v199_v54 = vsub.s32 %v196_v51, %v198_v52  ;;  %s2315_s19 = smov 104   ;;  %s2316_s20 = smov 40  }
   0xa   :  { %2183 = vmatpush3.bf16.msra.mxu1 %v2180_v19  ;;  %s2317_s21 = smov 8   ;;  %s2318_s22 = smov 16  }
   0xb   :  { %2055 = vmatprep.subr.mxu1 %v2303_v36  ;;  %v200_v55 = vrot.slane %v192_v53, %v199_v54  ;;  %s2319_s3 = smov 24  }
   0xd   :  { %v208_v56 = vrot.slane %v200_v55, %v199_v54  ;;  %v201_v58 = vcombine.high %v200_v55, %v200_v55 }
   0xf   :  { %v2471_v59 = vrot.slane %v208_v56, %v218_v57  ;;  %v215_v60 = vrot.slane %v201_v58, %v199_v54 }
  0x11   :  { %v2474_v2 = vrot.slane %v215_v60, %v218_v57 }
  0x90   :  { %v56_v4 = vpop.xlane.xlu0 %55 }
  0x91   :  { %v61_v5 = vmul.f32 0.03125, %v56_v4 }
  0x93   :  { %v63_v6 = vsub.f32 %v2400_v0, %v61_v5 }
  0x94   :  { %v59_v7 = vpop.xlane.xlu0 %58 }
  0x95   :  { %v62_v8 = vmul.f32 0.03125, %v59_v7  ;;  %v65_v9 = vmul.f32 %v63_v6, %v63_v6 }
  0x97   :  { %v64_v10 = vsub.f32 %v2405_v1, %v62_v8  ;;  %v67_v11 = vsel %vm53_vm0, %v65_v9, 0.0 }
  0x98   :  { %68 = vadd.xlane.f32.xlu1 %v67_v11 }
  0x99   :  { %v66_v12 = vmul.f32 %v64_v10, %v64_v10 }
  0x9b   :  { %v70_v13 = vsel %vm53_vm0, %v66_v12, 0.0 }
  0x9c   :  { %71 = vadd.xlane.f32.xlu1 %v70_v13 }
 0x125   :  { %v69_v20 = vpop.xlane.xlu1 %68 }
 0x126   :  { %v73_v21 = vmul.f32 0.03125, %v69_v20 }
 0x128   :  { %v75_v22 = vadd.f32 1e-06, %v73_v21 }
 0x129   :  { %v72_v23 = vpop.xlane.xlu1 %71 }
 0x12a   :  { %2235 = vrsqrt.f32 %v75_v22  ;;  %v74_v24 = vmul.f32 0.03125, %v72_v23 }
 0x12c   :  { %v76_v25 = vadd.f32 1e-06, %v74_v24 }
 0x12e   :  { %2237 = vrsqrt.f32 %v76_v25 }
 0x134   :  { %v2236_v26 = vpop.eup %2235 }
 0x135   :  { %v79_v28 = vmul.f32 %v2236_v26, %v63_v6 }
 0x137   :  { %v87_v30 = vmul.f32 %v1944_v27, %v79_v28 }
 0x138   :  { %v2238_v31 = vpop.eup %2237 }
 0x139   :  { %v80_v32 = vmul.f32 %v2238_v31, %v64_v10  ;;  %v95_v33 = vadd.f32 %v1945_v29, %v87_v30 }
 0x13b   :  { %v88_v34 = vmul.f32 %v1944_v27, %v80_v32  ;;  %2052 = vmatprep.mubr.msk.f32.mxu1 %vm53_vm0, %v95_v33 }
 0x13d   :  { %v96_v35 = vadd.f32 %v1945_v29, %v88_v34 }
 0x13f   :  { %2053 = vmatmul.mubr.msk.f32.vlgmr.msra.gmra.mrb[0].mxu1 %vm53_vm0, %v96_v35 }
 0x140   :  { %2057 = vmatprep.mubr.msk.f32.mxu1 %vm2304_vm1, %v2303_v36 }
 0x212   :  { %v2054_v38 = vpop.f32.mrb[0].mxu1 }
 0x213   :  { %v2444_v39 = vadd.f32 %v2054_v38, %v1946_v37  ;;  %v180_v40 = vpop.f32.mrb[1].mxu1 }
 0x214   :  { %v2446_v41 = vadd.f32 %v1946_v37, %v180_v40 }
 0x215   :  { %306 = vrot.lane.b32.xlu1 %v2444_v39, %s2305_s27  ;;  %v2461_v45 = vmul.f32 0.35355338, %v2444_v39 }
 0x216   :  { %227 = vrot.lane.b32.xlu0 %v2446_v41, %s2305_s27  ;;  %v2452_v43 = vmul.f32 0.35355338, %v2446_v41 }
 0x287   :  { %v307_v44 = vpop.permute.xlu1 %306 }
 0x288   :  { %v228_v42 = vpop.permute.xlu0 %227 }
 0x289   :  { %2056 = vmatpush3.xpose.msk.msra.mxu1 %vm229_vm2, %v228_v42 }
 0x28a   :  { %2060 = vmatprep.subr.mxu1 %v2303_v36 }
 0x28c   :  { %2058 = vmatmul.mubr.msk.f32.vlgmr.msra.gmra.mrb[2].mxu1 %vm229_vm2, %v2452_v43 }
 0x28d   :  { %2061 = vmatpush3.xpose.msk.msra.mxu1 %vm229_vm2, %v307_v44  ;;  %2062 = vmatprep.mubr.msk.f32.mxu1 %vm2304_vm1, %v2303_v36 }
 0x28e   :  { %2070 = vmatprep.subr.mxu1 %v2303_v36 }
 0x290   :  { %2063 = vmatmul.mubr.msk.f32.vlgmr.msra.gmra.mrb[4].mxu1 %vm229_vm2, %v2461_v45 }
 0x291   :  { %2072 = vmatprep.mubr.msk.f32.mxu1 %vm2304_vm1, %v2303_v36 }
 0x35f   :  { %v301_v61 = vpop.f32.mrb[2].mxu1 }
 0x360   :  { %v302_v62 = vadd.f32 %v301_v61, %v2471_v59  ;;  %v2059_v63 = vpop.f32.mrb[3].mxu1 }
 0x362   :  { %v383_v3 = vsel %vm229_vm2, %v302_v62, -inf }
 0x363   :  { %384 = vmax.xlane.f32.xlu1 %v383_v3  ;;  %v379_v4 = vpop.f32.mrb[4].mxu1 }
 0x364   :  { %v380_v5 = vadd.f32 %v379_v4, %v2474_v2  ;;  %v2064_v6 = vpop.f32.mrb[5].mxu1 }
 0x366   :  { %v386_v7 = vsel %vm229_vm2, %v380_v5, -inf }
 0x367   :  { %387 = vmax.xlane.f32.xlu0 %v386_v7 }
 0x374   :  { %477 = vrot.lane.b32.xlu1 %v2444_v39, %s2307_s1 }
 0x378   :  { %559 = vrot.lane.b32.xlu1 %v2446_v41, %s2308_s29 }
 0x37c   :  { %637 = vrot.lane.b32.xlu1 %v2444_v39, %s2308_s29 }
 0x37d   :  { %401 = vrot.lane.b32.xlu0 %v2446_v41, %s2307_s1 }
 0x380   :  { %635 = vrot.lane.b32.xlu1 %v2461_v45, %s2309_s30 }
 0x381   :  { %557 = vrot.lane.b32.xlu0 %v2452_v43, %s2309_s30 }
 0x384   :  { %807 = vrot.lane.b32.xlu1 %v2444_v39, %s2310_s15 }
 0x385   :  { %731 = vrot.lane.b32.xlu0 %v2446_v41, %s2310_s15  ;;  %s2320_s15 = smov [#allocation2]  }
 0x388   :  { %967 = vrot.lane.b32.xlu1 %v2444_v39, %s2311_s16 }
 0x3f0   :  { %v385_v8 = vpop.xlane.xlu1 %384 }
 0x3f1   :  { %v389_v9 = vsub.f32 %v302_v62, %v385_v8 }
 0x3f3   :  { %v391_v10 = vmul.f32 1.442695, %v389_v9 }
 0x3f4   :  { %v478_v11 = vpop.permute.xlu1 %477  ;;  %v388_v12 = vpop.xlane.xlu0 %387 }
 0x3f5   :  { %2239 = vpow2.f32 %v391_v10  ;;  %v390_v13 = vsub.f32 %v380_v5, %v388_v12  ;;  %2071 = vmatpush3.msra.mxu1 %v478_v11 }
 0x3f6   :  { %2080 = vmatprep.subr.mxu1 %v2303_v36 }
 0x3f7   :  { %v393_v14 = vmul.f32 1.442695, %v390_v13 }
 0x3f8   :  { %v560_v15 = vpop.permute.xlu1 %559  ;;  %v402_v16 = vpop.permute.xlu0 %401 }
 0x3f9   :  { %2241 = vpow2.f32 %v393_v14  ;;  %2066 = vmatpush3.msra.mxu0 %v402_v16 }
 0x3fa   :  { %2075 = vmatprep.subr.mxu0 %v2303_v36 }
 0x3fc   :  { %v638_v17 = vpop.permute.xlu1 %637  ;;  %v558_v18 = vpop.permute.xlu0 %557 }
 0x3ff   :  { %v2491_v19 = vpop.eup %2239 }
 0x400   :  { %2068 = vmatmul.mubr.msk.f32.vlgmr.msra.gmra.mrb[0].mxu0 %vm229_vm2, %v2491_v19  ;;  %v636_v20 = vpop.permute.xlu1 %635  ;;  %v732_v22 = vpop.permute.xlu0 %731 }
 0x401   :  { %2076 = vmatpush3.xpose.msk.msra.mxu0 %vm229_vm2, %v560_v15  ;;  %2077 = vmatprep.mubr.msk.f32.mxu0 %vm2304_vm1, %v2303_v36 }
 0x402   :  { %2085 = vmatprep.subr.mxu0 %v2303_v36 }
 0x403   :  { %v2499_v21 = vpop.eup %2241 }
 0x404   :  { %2073 = vmatmul.mubr.msk.f32.vlgmr.msra.gmra.mrb[6].mxu1 %vm229_vm2, %v2499_v21  ;;  %2078 = vmatmul.mubr.msk.f32.vlgmr.msra.gmra.mrb[2].mxu0 %vm229_vm2, %v558_v18  ;;  %v808_v23 = vpop.permute.xlu1 %807 }
 0x405   :  { %2081 = vmatpush3.xpose.msk.msra.mxu1 %vm229_vm2, %v638_v17  ;;  %2086 = vmatpush3.msra.mxu0 %v732_v22 }
 0x406   :  { %2082 = vmatprep.mubr.msk.f32.mxu1 %vm2304_vm1, %v2303_v36  ;;  %2090 = vmatprep.subr.mxu1 %v2303_v36 }
 0x407   :  { %2087 = vmatprep.mubr.msk.f32.mxu0 %vm2304_vm1, %v2303_v36  ;;  %2095 = vmatprep.subr.mxu0 %v2303_v36 }
 0x408   :  { %2083 = vmatmul.mubr.msk.f32.vlgmr.msra.gmra.mrb[8].mxu1 %vm229_vm2, %v636_v20  ;;  %v968_v37 = vpop.permute.xlu1 %967 }
 0x409   :  { %2091 = vmatpush3.msra.mxu1 %v808_v23  ;;  %2092 = vmatprep.mubr.msk.f32.mxu1 %vm2304_vm1, %v2303_v36 }
 0x40a   :  { %2100 = vmatprep.subr.mxu1 %v2303_v36 }
 0x4d3   :  { %v2515_v24 = vpop.f32.mrb[0].mxu0 }
 0x4d4   :  { %v2069_v25 = vpop.f32.mrb[1].mxu0 }
 0x4d7   :  { %v2517_v26 = vpop.f32.mrb[6].mxu1  ;;  %v631_v27 = vpop.f32.mrb[2].mxu0 }
 0x4d8   :  { %v632_v28 = vadd.f32 %v631_v27, %v2471_v59  ;;  %v2074_v29 = vpop.f32.mrb[7].mxu1  ;;  %v2079_v30 = vpop.f32.mrb[3].mxu0 }
 0x4da   :  { %v713_v31 = vsel %vm229_vm2, %v632_v28, -inf }
 0x4db   :  { %714 = vmax.xlane.f32.xlu0 %v713_v31  ;;  %v709_v32 = vpop.f32.mrb[8].mxu1 }
 0x4dc   :  { %v710_v33 = vadd.f32 %v709_v32, %v2474_v2  ;;  %v2084_v34 = vpop.f32.mrb[9].mxu1 }
 0x4de   :  { %v716_v35 = vsel %vm229_vm2, %v710_v33, -inf }
 0x4df   :  { %717 = vmax.xlane.f32.xlu1 %v716_v35 }
 0x4f0   :  { %965 = vrot.lane.b32.xlu1 %v2461_v45, %s2312_s0 }
 0x4f1   :  { %889 = vrot.lane.b32.xlu0 %v2446_v41, %s2311_s16  ;;  %s1933_s16 = sshll.u32 %s2320_s15, 4  ;;  %s1934_s16 = int_to_ptr.vmem [resolvable:$true] %s1933_s16 }
 0x4f2   :  { %p2284_p1 = scmp.lt.s32.totalorder %s1934_s16, %s1934_s16 }
 0x4f4   :  { %1137 = vrot.lane.b32.xlu1 %v2444_v39, %s2313_s17 }
 0x4f5   :  { %887 = vrot.lane.b32.xlu0 %v2452_v43, %s2312_s0  ;;  %s2279_s0 = scalar_lea.vmem %s1934_s16, 256 }
 0x4f6   :  { %p2280_p0 = scmp.ne.s32.totalorder %s1934_s16, %s2279_s0  ;;  %p2285_p2 = scmp.lt.s32.totalorder %s2279_s0, %s2279_s0 }
 0x4f8   :  { %1297 = vrot.lane.b32.xlu1 %v2444_v39, %s2314_s18  ;;  %p2286_p3 = por %p2285_p2, %p2284_p1 }
 0x4f9   :  { %1061 = vrot.lane.b32.xlu0 %v2446_v41, %s2313_s17 }
 0x4fa   :  { %p2287_p4 = pnand %p2286_p3, %p2280_p0 }
 0x568   :  { %v715_v38 = vpop.xlane.xlu0 %714 }
 0x569   :  { %v719_v40 = vsub.f32 %v632_v28, %v715_v38 }
 0x56b   :  { %v721_v42 = vmul.f32 1.442695, %v719_v40 }
 0x56c   :  { %v718_v44 = vpop.xlane.xlu1 %717  ;;  %v890_v48 = vpop.permute.xlu0 %889 }
 0x56d   :  { %2243 = vpow2.f32 %v721_v42  ;;  %v720_v46 = vsub.f32 %v710_v33, %v718_v44 }
 0x56f   :  { %v723_v47 = vmul.f32 1.442695, %v720_v46 }
 0x570   :  { %v888_v49 = vpop.permute.xlu0 %887  ;;  %v966_v51 = vpop.permute.xlu1 %965 }
 0x571   :  { %2245 = vpow2.f32 %v723_v47 }
 0x574   :  { %v1062_v53 = vpop.permute.xlu0 %1061  ;;  %v1138_v54 = vpop.permute.xlu1 %1137 }
 0x577   :  { %v2531_v50 = vpop.eup %2243 }
 0x578   :  { %2088 = vmatmul.mubr.msk.f32.vlgmr.msra.gmra.mrb[4].mxu0 %vm229_vm2, %v2531_v50  ;;  %v1298_v7 = vpop.permute.xlu1 %1297 }
 0x579   :  { %2096 = vmatpush3.xpose.msk.msra.mxu0 %vm229_vm2, %v890_v48  ;;  %2097 = vmatprep.mubr.msk.f32.mxu0 %vm2304_vm1, %v2303_v36  ;;  %v395_v48 = vsel %vm229_vm2, %v2491_v19, 0.0 }
 0x57a   :  { %2105 = vmatprep.subr.mxu0 %v2303_v36 }
 0x57b   :  { %v2539_v52 = vpop.eup %2245 }
 0x57c   :  { %2093 = vmatmul.mubr.msk.f32.vlgmr.msra.gmra.mrb[10].mxu1 %vm229_vm2, %v2539_v52  ;;  %2098 = vmatmul.mubr.msk.f32.vlgmr.msra.gmra.mrb[6].mxu0 %vm229_vm2, %v888_v49  ;;  %v728_v33 = vsel %vm229_vm2, %v2539_v52, 0.0 }
 0x57d   :  { %2101 = vmatpush3.xpose.msk.msra.mxu1 %vm229_vm2, %v968_v37  ;;  %2106 = vmatpush3.msra.mxu0 %v1062_v53 }
 0x57e   :  { %2102 = vmatprep.mubr.msk.f32.mxu1 %vm2304_vm1, %v2303_v36  ;;  %2110 = vmatprep.subr.mxu1 %v2303_v36 }
 0x57f   :  { %2107 = vmatprep.mubr.msk.f32.mxu0 %vm2304_vm1, %v2303_v36  ;;  %2115 = vmatprep.subr.mxu0 %v2303_v36 }
 0x580   :  { %2103 = vmatmul.mubr.msk.f32.vlgmr.msra.gmra.mrb[12].mxu1 %vm229_vm2, %v966_v51 }
 0x581   :  { %2111 = vmatpush3.msra.mxu1 %v1138_v54  ;;  %2112 = vmatprep.mubr.msk.f32.mxu1 %vm2304_vm1, %v2303_v36 }
 0x582   :  { %2120 = vmatprep.subr.mxu1 %v2303_v36 }
 0x64b   :  { %v2555_v55 = vpop.f32.mrb[4].mxu0 }
 0x64c   :  { %v2089_v56 = vpop.f32.mrb[5].mxu0 }
 0x64f   :  { %v2557_v57 = vpop.f32.mrb[10].mxu1  ;;  %v961_v58 = vpop.f32.mrb[6].mxu0 }
 0x650   :  { %v962_v60 = vadd.f32 %v961_v58, %v2471_v59  ;;  %v2094_v61 = vpop.f32.mrb[11].mxu1  ;;  %v2099_v62 = vpop.f32.mrb[7].mxu0 }
 0x652   :  { %v1043_v63 = vsel %vm229_vm2, %v962_v60, -inf }
 0x653   :  { %1044 = vmax.xlane.f32.xlu0 %v1043_v63  ;;  %v1039_v3 = vpop.f32.mrb[12].mxu1 }
 0x654   :  { %v1040_v4 = vadd.f32 %v1039_v3, %v2474_v2  ;;  %v2104_v5 = vpop.f32.mrb[13].mxu1  ;;  %v1580_v3 = vld [vmem:[%s2719_s4 + $0x8] sm:$0xff] }
 0x655   :  { %v1581_v5 = vld [vmem:[%s2719_s4 + $0x10] sm:$0xff] }
 0x656   :  { %v1046_v6 = vsel %vm229_vm2, %v1040_v4, -inf }
 0x657   :  { %1047 = vmax.xlane.f32.xlu1 %v1046_v6  ;;  %v1582_v6 = vld [vmem:[%s2719_s4 + $0x18] sm:$0xff] }
 0x668   :  { %1295 = vrot.lane.b32.xlu1 %v2461_v45, %s2315_s19 }
 0x669   :  { %1219 = vrot.lane.b32.xlu0 %v2446_v41, %s2314_s18 }
 0x66d   :  { %1217 = vrot.lane.b32.xlu0 %v2452_v43, %s2315_s19 }
 0x6e0   :  { %v1045_v8 = vpop.xlane.xlu0 %1044 }
 0x6e1   :  { %v1049_v9 = vsub.f32 %v962_v60, %v1045_v8 }
 0x6e3   :  { %v1051_v10 = vmul.f32 1.442695, %v1049_v9 }
 0x6e4   :  { %v1048_v11 = vpop.xlane.xlu1 %1047  ;;  %v1220_v14 = vpop.permute.xlu0 %1219 }
 0x6e5   :  { %2247 = vpow2.f32 %v1051_v10  ;;  %v1050_v12 = vsub.f32 %v1040_v4, %v1048_v11 }
 0x6e7   :  { %v1053_v13 = vmul.f32 1.442695, %v1050_v12 }
 0x6e8   :  { %v1218_v45 = vpop.permute.xlu0 %1217  ;;  %v1296_v16 = vpop.permute.xlu1 %1295 }
 0x6e9   :  { %2249 = vpow2.f32 %v1053_v13 }
 0x6ef   :  { %v2248_v15 = vpop.eup %2247 }
 0x6f0   :  { %2108 = vmatmul.mubr.msk.f32.vlgmr.msra.gmra.mrb[8].mxu0 %vm229_vm2, %v2248_v15 }
 0x6f1   :  { %2116 = vmatpush3.xpose.msk.msra.mxu0 %vm229_vm2, %v1220_v14  ;;  %2117 = vmatprep.mubr.msk.f32.mxu0 %vm2304_vm1, %v2303_v36 }
 0x6f2   :  { %2125 = vmatprep.subr.mxu0 %v2303_v36 }
 0x6f3   :  { %v2250_v43 = vpop.eup %2249 }
 0x6f4   :  { %2113 = vmatmul.mubr.msk.f32.vlgmr.msra.gmra.mrb[14].mxu1 %vm229_vm2, %v2250_v43  ;;  %2118 = vmatmul.mubr.msk.f32.vlgmr.msra.gmra.mrb[10].mxu0 %vm229_vm2, %v1218_v45 }
 0x6f5   :  { %2121 = vmatpush3.xpose.msk.msra.mxu1 %vm229_vm2, %v1298_v7  ;;  %2122 = vmatprep.mubr.msk.f32.mxu1 %vm2304_vm1, %v2303_v36  ;;  %v2188_v7 = vpack.c.bf16 %v1582_v6, %v1581_v5  ;;  %v1977_v5 = vld [vmem:[%s2724_s9] ss:$0 sm:$0xff] }
 0x6f6   :  { %2130 = vmatprep.subr.mxu1 %v2303_v36  ;;  %2127 = vmatprep.mubr.msk.f32.mxu0 %vm2304_vm1, %v2303_v36 }
 0x6f8   :  { %2123 = vmatmul.mubr.msk.f32.vlgmr.msra.gmra.mrb[16].mxu1 %vm229_vm2, %v1296_v16 }
 0x6f9   :  { %2132 = vmatprep.mubr.msk.f32.mxu1 %vm2304_vm1, %v2303_v36  ;;  %v725_v36 = vsel %vm229_vm2, %v2531_v50, 0.0  ;;  %v398_v50 = vsel %vm229_vm2, %v2499_v21, 0.0 }
 0x7c3   :  { %v2583_v17 = vpop.f32.mrb[8].mxu0 }
 0x7c4   :  { %v2109_v18 = vpop.f32.mrb[9].mxu0 }
 0x7c7   :  { %v2585_v20 = vpop.f32.mrb[14].mxu1  ;;  %v1291_v22 = vpop.f32.mrb[10].mxu0 }
 0x7c8   :  { %v1292_v23 = vadd.f32 %v1291_v22, %v2471_v59  ;;  %v2114_v25 = vpop.f32.mrb[15].mxu1  ;;  %v2119_v27 = vpop.f32.mrb[11].mxu0  ;;  %v1055_v59 = vsel %vm229_vm2, %v2248_v15, 0.0 }
 0x7ca   :  { %v1373_v28 = vsel %vm229_vm2, %v1292_v23, -inf }
 0x7cb   :  { %1374 = vmax.xlane.f32.xlu0 %v1373_v28  ;;  %v1369_v29 = vpop.f32.mrb[16].mxu1 }
 0x7cc   :  { %v1370_v30 = vadd.f32 %v1369_v29, %v2474_v2  ;;  %v2124_v31 = vpop.f32.mrb[17].mxu1  ;;  %v1058_v2 = vsel %vm229_vm2, %v2250_v43, 0.0 }
 0x7ce   :  { %v1376_v32 = vsel %vm229_vm2, %v1370_v30, -inf }
 0x7cf   :  { %1377 = vmax.xlane.f32.xlu1 %v1376_v32 }
 0x7e0   :  { %1467 = vrot.lane.b32.xlu1 %v2444_v39, %s2316_s20 }
 0x7e1   :  { %1391 = vrot.lane.b32.xlu0 %v2446_v41, %s2316_s20 }
 0x800   :  { %726 = vadd.xlane.f32.xlu0 %v725_v36 }
 0x804   :  { %1056 = vadd.xlane.f32.xlu0 %v1055_v59  ;;  %729 = vadd.xlane.f32.xlu1 %v728_v33 }
 0x808   :  { %1059 = vadd.xlane.f32.xlu0 %v1058_v2 }
 0x858   :  { %v1375_v34 = vpop.xlane.xlu0 %1374 }
 0x859   :  { %v1379_v35 = vsub.f32 %v1292_v23, %v1375_v34 }
 0x85b   :  { %v1381_v37 = vmul.f32 1.442695, %v1379_v35 }
 0x85c   :  { %v1392_v39 = vpop.permute.xlu0 %1391  ;;  %v1378_v38 = vpop.xlane.xlu1 %1377 }
 0x85d   :  { %2251 = vpow2.f32 %v1381_v37  ;;  %v1380_v41 = vsub.f32 %v1370_v30, %v1378_v38  ;;  %2126 = vmatpush3.msra.mxu0 %v1392_v39 }
 0x85f   :  { %v1383_v40 = vmul.f32 1.442695, %v1380_v41 }
 0x860   :  { %v1468_v42 = vpop.permute.xlu1 %1467 }
 0x861   :  { %2253 = vpow2.f32 %v1383_v40  ;;  %2131 = vmatpush3.msra.mxu1 %v1468_v42 }
 0x867   :  { %v2252_v44 = vpop.eup %2251 }
 0x868   :  { %2128 = vmatmul.mubr.msk.f32.vlgmr.msra.gmra.mrb[12].mxu0 %vm229_vm2, %v2252_v44  ;;  %v1385_v46 = vsel %vm229_vm2, %v2252_v44, 0.0 }
 0x869   :  { %1386 = vadd.xlane.f32.xlu0 %v1385_v46 }
 0x86b   :  { %v2254_v47 = vpop.eup %2253 }
 0x86c   :  { %2133 = vmatmul.mubr.msk.f32.vlgmr.msra.gmra.mrb[18].mxu1 %vm229_vm2, %v2254_v47  ;;  %v1388_v49 = vsel %vm229_vm2, %v2254_v47, 0.0 }
 0x86d   :  { %396 = vadd.xlane.f32.xlu0 %v395_v48  ;;  %1389 = vadd.xlane.f32.xlu1 %v1388_v49 }
 0x871   :  { %399 = vadd.xlane.f32.xlu1 %v398_v50 }
 0x88d   :  { %v727_v51 = vpop.xlane.xlu0 %726 }
 0x88e   :  { %2255 = vrcp.f32 %v727_v51 }
 0x891   :  { %v1057_v52 = vpop.xlane.xlu0 %1056  ;;  %v730_v53 = vpop.xlane.xlu1 %729 }
 0x892   :  { %2257 = vrcp.f32 %v730_v53  ;;  %v1718_v53 = vld [vmem:[%s2725_s10 + $0x8] sm:$0xff] }
 0x893   :  { %2259 = vrcp.f32 %v1057_v52  ;;  %v1717_v52 = vld [vmem:[%s2725_s10] sm:$0xff] }
 0x895   :  { %v1060_v54 = vpop.xlane.xlu0 %1059 }
 0x896   :  { %2261 = vrcp.f32 %v1060_v54  ;;  %v2192_v54 = vpack.c.bf16 %v1718_v53, %v1717_v52 }
 0x898   :  { %v2256_v56 = vpop.eup %2255  ;;  %2193 = vmatprep.subr.bf16.mxu1 %v2192_v54 }
 0x899   :  { %v884_v58 = vmul.f32 %v2256_v56, %v2555_v55  ;;  %v1579_v55 = vld [vmem:[%s2719_s4] sm:$0xff]  ;;  %2195 = vmatpush3.bf16.msra.mxu1 %v2192_v54  ;;  %v1719_v56 = vld [vmem:[%s2725_s10 + $0x10] sm:$0xff] }
 0x89b   :  { %1549 = vrot.lane.b32.xlu0 %v884_v58, %s2317_s21  ;;  %v1720_v58 = vld [vmem:[%s2725_s10 + $0x18] sm:$0xff] }
 0x89c   :  { %v2258_v19 = vpop.eup %2257 }
 0x89d   :  { %v886_v60 = vmul.f32 %v2258_v19, %v2557_v57  ;;  %v2260_v61 = vpop.eup %2259  ;;  %v2184_v57 = vpack.c.bf16 %v1580_v3, %v1579_v55  ;;  %v2196_v19 = vpack.c.bf16 %v1720_v58, %v1719_v56 }
 0x89e   :  { %v1214_v21 = vmul.f32 %v2260_v61, %v2583_v17 }
 0x89f   :  { %1551 = vrot.lane.b32.xlu1 %v886_v60, %s2317_s21  ;;  %2185 = vmatprep.subr.bf16.mxu0 %v2184_v57 }
 0x8a0   :  { %v2262_v62 = vpop.eup %2261  ;;  %2187 = vmatpush3.bf16.msra.mxu0 %v2184_v57  ;;  %2197 = vmatprep.subr.bf16.mxu1 %v2196_v19  ;;  %v1976_v57 = vld [vmem:[%s2723_s8] ss:$0 sm:$0xff] }
 0x8a1   :  { %v1216_v63 = vmul.f32 %v2262_v62, %v2585_v20  ;;  %2189 = vmatprep.subr.bf16.mxu0 %v2188_v7  ;;  %2199 = vmatpush3.bf16.msra.mxu1 %v2196_v19 }
 0x8a3   :  { %1557 = vrot.lane.b32.xlu1 %v1214_v21, %s2318_s22 }
 0x8a4   :  { %2191 = vmatpush3.bf16.msra.mxu0 %v2188_v7 }
 0x8a7   :  { %1559 = vrot.lane.b32.xlu1 %v1216_v63, %s2318_s22 }
 0x8f6   :  { %v1387_v4 = vpop.xlane.xlu0 %1386 }
 0x8f7   :  { %2263 = vrcp.f32 %v1387_v4 }
 0x8fa   :  { %v1390_v8 = vpop.xlane.xlu1 %1389  ;;  %v397_v45 = vpop.xlane.xlu0 %396 }
 0x8fb   :  { %2265 = vrcp.f32 %v1390_v8 }
 0x8fc   :  { %2267 = vrcp.f32 %v397_v45 }
 0x8fe   :  { %v400_v16 = vpop.xlane.xlu1 %399 }
 0x8ff   :  { %2269 = vrcp.f32 %v400_v16  ;;  %v1831_v16 = vld [vmem:[%s2727_s12 + $0x20] sm:$0xff] }
 0x901   :  { %v2264_v9 = vpop.eup %2263 }
 0x905   :  { %v2266_v13 = vpop.eup %2265 }
 0x906   :  { %v2268_v18 = vpop.eup %2267 }
 0x907   :  { %v554_v23 = vmul.f32 %v2268_v18, %v2515_v24  ;;  %v1973_v24 = vld [vmem:[%s2720_s5] ss:$0 sm:$0xff] }
 0x909   :  { %v2270_v25 = vpop.eup %2269 }
 0x90a   :  { %v556_v31 = vmul.f32 %v2270_v25, %v2517_v26  ;;  %v1978_v25 = vld [vmem:[%s2726_s11] ss:$0 sm:$0xff] }
 0x90d   :  { %v1550_v22 = vpop.permute.xlu0 %1549 }
 0x90e   :  { %v1571_v27 = vsel %vm229_vm2, %v554_v23, %v1550_v22  ;;  %v1834_v22 = vld [vmem:[%s2727_s12 + $0x38] sm:$0xff] }
 0x911   :  { %v1552_v17 = vpop.permute.xlu1 %1551 }
 0x912   :  { %v1572_v36 = vsel %vm229_vm2, %v556_v31, %v1552_v17  ;;  %v1832_v17 = vld [vmem:[%s2727_s12 + $0x28] sm:$0xff] }
 0x913   :  { %v2208_v18 = vpack.c.bf16 %v1832_v17, %v1831_v16 }
 0x915   :  { %v1558_v20 = vpop.permute.xlu1 %1557 }
 0x916   :  { %v1574_v28 = vsel %vm1573_vm3, %v1571_v27, %v1558_v20  ;;  %v1833_v20 = vld [vmem:[%s2727_s12 + $0x30] sm:$0xff] }
 0x917   :  { %v2212_v23 = vpack.c.bf16 %v1834_v22, %v1833_v20 }
 0x919   :  { %v1560_v29 = vpop.permute.xlu1 %1559 }
 0x91a   :  { %v1575_v59 = vsel %vm1573_vm3, %v1572_v36, %v1560_v29 }
 0x93b   :  { %v1463_v10 = vpop.f32.mrb[12].mxu0 }
 0x93c   :  { %v1544_v11 = vmul.f32 %v2264_v9, %v1463_v10  ;;  %v2129_v12 = vpop.f32.mrb[13].mxu0 }
 0x93d   :  { %v1827_v12 = vld [vmem:[%s2727_s12] sm:$0xff] }
 0x93e   :  { %1565 = vrot.lane.b32.xlu0 %v1544_v11, %s2319_s3 }
 0x93f   :  { %v1539_v14 = vpop.f32.mrb[18].mxu1 }
 0x940   :  { %v1546_v15 = vmul.f32 %v2266_v13, %v1539_v14  ;;  %v2134_v43 = vpop.f32.mrb[19].mxu1  ;;  %v1828_v13 = vld [vmem:[%s2727_s12 + $0x8] sm:$0xff] }
 0x941   :  { %v2200_v14 = vpack.c.bf16 %v1828_v13, %v1827_v12  ;;  %v1830_v43 = vld [vmem:[%s2727_s12 + $0x18] sm:$0xff] }
 0x942   :  { %1567 = vrot.lane.b32.xlu1 %v1546_v15, %s2319_s3  ;;  %v1829_v15 = vld [vmem:[%s2727_s12 + $0x10] sm:$0xff] }
 0x943   :  { %v2204_v45 = vpack.c.bf16 %v1830_v43, %v1829_v15  ;;  %2201 = vmatprep.subr.bf16.mxu0 %v2200_v14 }
 0x9b0   :  { %v1566_v30 = vpop.permute.xlu0 %1565 }
 0x9b1   :  { %v1577_v32 = vsel %vm1576_vm4, %v1574_v28, %v1566_v30 }
 0x9b2   :  { %2143 = vmatprep.mubr.msk.f32.mxu0 %vm53_vm0, %v1577_v32 }
 0x9b4   :  { %v1568_v33 = vpop.permute.xlu1 %1567 }
 0x9b5   :  { %v1578_v2 = vsel %vm1576_vm4, %v1575_v59, %v1568_v33 }
 0x9b6   :  { %2144 = vmatmul.mubr.msk.f32.vlgmr.msra.gmra.mrb[14].mxu0 %vm53_vm0, %v1578_v2 }
 0x9b7   :  { %2203 = vmatpush3.bf16.msra.mxu0 %v2200_v14 }
 0x9b8   :  { %2205 = vmatprep.subr.bf16.mxu0 %v2204_v45 }
 0x9bb   :  { %2207 = vmatpush3.bf16.msra.mxu0 %v2204_v45 }
 0x9bc   :  { %2209 = vmatprep.subr.bf16.mxu0 %v2208_v18 }
 0x9bf   :  { %2211 = vmatpush3.bf16.msra.mxu0 %v2208_v18 }
 0x9c0   :  { %2213 = vmatprep.subr.bf16.mxu0 %v2212_v23 }
 0x9c3   :  { %2215 = vmatpush3.bf16.msra.mxu0 %v2212_v23 }
 0xa89   :  { %v2145_v34 = vpop.f32.mrb[14].mxu0 }
 0xa8a   :  { %v1668_v35 = vadd.f32 %v2145_v34, %v1973_v24  ;;  %v1662_v37 = vpop.f32.mrb[15].mxu0 }
 0xa8b   :  { %v1663_v39 = vadd.f32 %v1973_v24, %v1662_v37 }
 0xa8c   :  { %v2635_v26 = vadd.f32 %v1668_v35, %v2405_v1 }
 0xa8d   :  { %v2638_v38 = vadd.f32 %v1663_v39, %v2400_v0 }
 0xa8e   :  { %v1678_v41 = vsel %vm53_vm0, %v2635_v26, 0.0 }
 0xa8f   :  { %1679 = vadd.xlane.f32.xlu1 %v1678_v41  ;;  %v1675_v40 = vsel %vm53_vm0, %v2638_v38, 0.0 }
 0xa90   :  { %1676 = vadd.xlane.f32.xlu0 %v1675_v40 }
 0xb1c   :  { %v1680_v42 = vpop.xlane.xlu1 %1679 }
 0xb1d   :  { %v1682_v44 = vmul.f32 0.03125, %v1680_v42  ;;  %v1677_v46 = vpop.xlane.xlu0 %1676 }
 0xb1e   :  { %v1681_v47 = vmul.f32 0.03125, %v1677_v46 }
 0xb1f   :  { %v1684_v48 = vsub.f32 %v2635_v26, %v1682_v44 }
 0xb20   :  { %v1683_v1 = vsub.f32 %v2638_v38, %v1681_v47 }
 0xb21   :  { %v1686_v50 = vmul.f32 %v1684_v48, %v1684_v48 }
 0xb22   :  { %v1685_v49 = vmul.f32 %v1683_v1, %v1683_v1 }
 0xb23   :  { %v1690_v51 = vsel %vm53_vm0, %v1686_v50, 0.0 }
 0xb24   :  { %v1687_v0 = vsel %vm53_vm0, %v1685_v49, 0.0 }
 0xb25   :  { %1688 = vadd.xlane.f32.xlu0 %v1687_v0 }
 0xb29   :  { %1691 = vadd.xlane.f32.xlu0 %v1690_v51 }
 0xbb2   :  { %v1689_v60 = vpop.xlane.xlu0 %1688 }
 0xbb3   :  { %v1693_v61 = vmul.f32 0.03125, %v1689_v60 }
 0xbb5   :  { %v1695_v21 = vadd.f32 1e-06, %v1693_v61 }
 0xbb6   :  { %v1692_v62 = vpop.xlane.xlu0 %1691 }
 0xbb7   :  { %2271 = vrsqrt.f32 %v1695_v21  ;;  %v1694_v63 = vmul.f32 0.03125, %v1692_v62 }
 0xbb9   :  { %v1696_v55 = vadd.f32 1e-06, %v1694_v63 }
 0xbbb   :  { %2273 = vrsqrt.f32 %v1696_v55 }
 0xbc1   :  { %v2272_v3 = vpop.eup %2271 }
 0xbc2   :  { %v1699_v4 = vmul.f32 %v2272_v3, %v1683_v1  ;;  %v1981_v1 = vld [vmem:[%s2728_s13] ss:$0 sm:$0xff] }
 0xbc4   :  { %v1707_v6 = vmul.f32 %v1976_v57, %v1699_v4 }
 0xbc5   :  { %v2274_v7 = vpop.eup %2273 }
 0xbc6   :  { %v1700_v8 = vmul.f32 %v2274_v7, %v1684_v48  ;;  %v1715_v9 = vadd.f32 %v1977_v5, %v1707_v6 }
 0xbc8   :  { %v1708_v10 = vmul.f32 %v1976_v57, %v1700_v8  ;;  %2154 = vmatprep.mubr.msk.f32.mxu1 %vm53_vm0, %v1715_v9 }
 0xbca   :  { %v1716_v11 = vadd.f32 %v1977_v5, %v1708_v10 }
 0xbcc   :  { %2155 = vmatmul.mubr.msk.f32.vlgmr.msra.gmra.mrb[20].mxu1 %vm53_vm0, %v1716_v11 }
 0xc9f   :  { %v2156_v27 = vpop.f32.mrb[20].mxu1 }
 0xca0   :  { %v1806_v28 = vadd.f32 %v2156_v27, %v1978_v25  ;;  %v1800_v29 = vpop.f32.mrb[21].mxu1 }
 0xca1   :  { %v1801_v30 = vadd.f32 %v1978_v25, %v1800_v29 }
 0xca2   :  { %v1812_v31 = vmul.f32 0.044715, %v1806_v28  ;;  %v1810_v46 = vmul.f32 0.5, %v1806_v28 }
 0xca3   :  { %v1811_v32 = vmul.f32 0.044715, %v1801_v30  ;;  %v1809_v42 = vmul.f32 0.5, %v1801_v30 }
 0xca4   :  { %v1814_v36 = vmul.f32 %v1812_v31, %v1806_v28 }
 0xca5   :  { %v1813_v59 = vmul.f32 %v1811_v32, %v1801_v30 }
 0xca6   :  { %v1816_v33 = vmul.f32 %v1814_v36, %v1806_v28 }
 0xca7   :  { %v1815_v2 = vmul.f32 %v1813_v59, %v1801_v30 }
 0xca8   :  { %v1818_v24 = vadd.f32 %v1816_v33, %v1806_v28 }
 0xca9   :  { %v1817_v34 = vadd.f32 %v1815_v2, %v1801_v30 }
 0xcaa   :  { %v1820_v35 = vmul.f32 0.7978845, %v1818_v24 }
 0xcab   :  { %v1819_v37 = vmul.f32 0.7978845, %v1817_v34 }
 0xcac   :  { %2275 = vtanh.f32 %v1820_v35 }
 0xcad   :  { %2277 = vtanh.f32 %v1819_v37 }
 0xcb6   :  { %v2276_v39 = vpop.eup %2275 }
 0xcb7   :  { %v2278_v41 = vpop.eup %2277  ;;  %v1824_v40 = vadd.f32 1.0, %v2276_v39 }
 0xcb8   :  { %v1823_v44 = vadd.f32 1.0, %v2278_v41 }
 0xcb9   :  { %v1826_v48 = vmul.f32 %v1824_v40, %v1810_v46 }
 0xcba   :  { %v1825_v47 = vmul.f32 %v1823_v44, %v1809_v42 }
 0xcbc   :  { %2173 = vmatprep.mubr.msk.f32.mxu0 %vm1842_vm5, %v1825_v47 }
 0xcbd   :  { %2174 = vmatmul.mubr.msk.f32.vlgmr.msra.gmra.mrb[16].mxu0 %vm1842_vm5, %v1826_v48 }
 0xd90   :  { %v2175_v49 = vpop.f32.mrb[16].mxu0 }
 0xd91   :  { %v1921_v0 = vadd.f32 %v2175_v49, %v1981_v1  ;;  %v1915_v50 = vpop.f32.mrb[17].mxu0 }
 0xd92   :  { %v1916_v51 = vadd.f32 %v1981_v1, %v1915_v50 }
 0xd93   :  { %v1925_v52 = vadd.f32 %v1921_v0, %v2635_v26 }
 0xd94   :  { %v1924_v53 = vadd.f32 %v1916_v51, %v2638_v38 }
 0xd95   :  { %1927 = vst.msk [vmem:[#allocation2 + $0x8] sm:$0xff] %vm53_vm0, %v1925_v52 }
 0xd96   :  { %1926 = vst.msk [vmem:[#allocation2] sm:$0xff] %vm53_vm0, %v1924_v53 }
 0xd97   :  { %2290 = shalt.err (!%p2287_p4)
}
 0xd98   :  { %s2291_s18 = scalar_lea.hbm %s2729_s14, 256 }
 0xd99   :  { %p2292_p5 = scmp.ne.s32.totalorder %s2729_s14, %s2291_s18  ;;  %p2295_p6 = scmp.lt.u32.totalorder %s2291_s18, %s2729_s14 }
 0xd9b   :  { %p2297_p7 = pnand %p2295_p6, %p2292_p5 }
 0xd9d   :  { %2300 = shalt.err (!%p2297_p7)
}
 0xd9e   :  { %s2321_s23 = smov 128  }
 0xd9f   :  { %1939 = dma.vmem_to_hbm [thread:$0]  %s1934_s16, 256, %s2729_s14, [#allocation3], %s2321_s23, %s2321_s23, %s2317_s21  }
 0xda0   :  { %2301 = dma.done.wait [#allocation3], 256  }
 0xda1   :  { %2302 = vsyncadd [#allocation3], 4294967040 }
 0xda2   :  { %1943 = vsyncpa [#allocation3], 1 }

</bundles_post_ra>
